<compile_context>
chip_gen: v7x
topology: tpu7x:2x2x1
jax: 0.10.0
libtpu: 0.0.40
codegen_flags: <defaults>
</compile_context>

<pallas_src>
import functools

import jax
import jax.numpy as jnp
from jax.experimental import pallas as pl
from jax.experimental.pallas import tpu as pltpu


def _round_up(x, m):
    return ((x + m - 1) // m) * m


def _bannai_ito_kan_kernel(coefs_ref, x_ref, w_ref, bias_ref, o_ref, bmat_ref,
                           *, degree, ipad):
    """coefs_ref: SMEM f32[3*(degree+1)] = [An | Cn | inv_n] (index 0 unused,
    index 1 holds the degree-1 special case: A1=a, C1=0, inv1=1/(b+c+1)).
    x_ref: (TB, I_pad) input tile (native dtype).
    w_ref: (degree*I_pad, O_pad) bf16 resident weights (degrees 1..degree).
    bias_ref: (1, O_pad) f32 bias = column-sum of degree-0 coefficients.
    bmat_ref: (TB, degree*I_pad) bf16 VMEM scratch slab for the basis."""
    d1 = degree + 1

    x = jnp.tanh(x_ref[...].astype(jnp.float32))

    # Degree 0 basis (all ones) is folded into bias_ref; only keep it live for
    # the three-term recurrence.
    b_prev2 = jnp.ones_like(x)

    # Degree 1:  (x - a) * 1/(b + c + 1)
    a1 = coefs_ref[1]
    inv1 = coefs_ref[2 * d1 + 1]
    b_prev1 = (x - a1) * inv1
    bmat_ref[:, 0:ipad] = b_prev1.astype(jnp.bfloat16)

    # Degrees 2..degree: three-term recurrence, multiplies only (divisions were
    # folded into the precomputed scalars).  Static Python loop -> unrolled.
    for n in range(2, degree + 1):
        An = coefs_ref[n]
        Cn = coefs_ref[d1 + n]
        inv_n = coefs_ref[2 * d1 + n]
        b_new = ((x - An) * b_prev1 - Cn * b_prev2) * inv_n
        lo = (n - 1) * ipad  # static, lane-aligned (ipad % 128 == 0)
        bmat_ref[:, lo:lo + ipad] = b_new.astype(jnp.bfloat16)
        b_prev2 = b_prev1
        b_prev1 = b_new

    # Single MXU matmul over the whole basis slab (bf16 x bf16 -> f32 acc),
    # plus the folded degree-0 bias.
    o_ref[...] = (
        jnp.dot(bmat_ref[...], w_ref[...], preferred_element_type=jnp.float32)
        + bias_ref[...]
    )


def bannai_ito_kan_layer(x, coeffs, a, b, c, *, degree, batch_tile=512):
    """x: (batch, input_dim); coeffs: (input_dim, output_dim, degree+1);
    a, b, c: scalar parameters (shape (1,) arrays). Returns (batch, output_dim) f32."""
    batch, input_dim = x.shape
    ci, output_dim, d1 = coeffs.shape
    assert ci == input_dim and d1 == degree + 1
    # TODO(synk): degree == 0 degenerates to a pure bias; not routed through the kernel.
    assert degree >= 1, "kernel path requires degree >= 1"

    # ---- padding / tiling choices -------------------------------------------
    i_pad = _round_up(input_dim, 128)     # lane-aligned per-degree slabs
    o_pad = _round_up(output_dim, 128)    # unmasked lane-dense output stores
    tb = min(batch_tile, _round_up(batch, 16))   # sublane-friendly (bf16 slab)
    b_pad = _round_up(batch, tb)
    n_tiles = b_pad // tb

    # ---- scalar recurrence coefficients (plain JAX, lands in SMEM) ----------
    a_s = a.reshape(()).astype(jnp.float32)
    b_s = b.reshape(()).astype(jnp.float32)
    c_s = c.reshape(()).astype(jnp.float32)
    ns = jnp.arange(d1, dtype=jnp.float32)              # 0..degree
    denom = ns + b_s + c_s
    safe = jnp.where(denom == 0, 1.0, denom)
    An = (2.0 * ns + b_s + c_s - 1.0) * (2.0 * ns + b_s + c_s) / (2.0 * safe)
    Cn = -(ns + b_s - 1.0) * (ns + c_s - 1.0) / (2.0 * safe)
    inv_n = 1.0 / safe
    # degree-1 special case
    An = An.at[1].set(a_s)
    Cn = Cn.at[1].set(0.0)
    inv_n = inv_n.at[1].set(1.0 / (b_s + c_s + 1.0))
    coefs = jnp.concatenate([An, Cn, inv_n]).astype(jnp.float32)  # (3*(degree+1),)

    # ---- weights: degree 0 -> bias, degrees 1..D -> bf16 resident matrix ----
    cf = coeffs.astype(jnp.float32)
    bias = jnp.sum(cf[:, :, 0], axis=0)                           # (O,)
    bias = jnp.pad(bias, (0, o_pad - output_dim)).reshape(1, o_pad)
    w = jnp.transpose(cf[:, :, 1:], (2, 0, 1))                    # (D, I, O)
    w = jnp.pad(w, ((0, 0), (0, i_pad - input_dim), (0, o_pad - output_dim)))
    w = w.reshape(degree * i_pad, o_pad).astype(jnp.bfloat16)

    # ---- input: keep native dtype, zero-pad batch / lanes -------------------
    x_p = jnp.pad(x, ((0, b_pad - batch), (0, i_pad - input_dim)))

    kernel = functools.partial(_bannai_ito_kan_kernel, degree=degree, ipad=i_pad)

    out = pl.pallas_call(
        kernel,
        out_shape=jax.ShapeDtypeStruct((b_pad, o_pad), jnp.float32),
        grid_spec=pltpu.PrefetchScalarGridSpec(
            num_scalar_prefetch=0,
            grid=(n_tiles,),
            in_specs=[
                # scalar recurrence coefficients -> SMEM (untiled)
                pl.BlockSpec(memory_space=pltpu.MemorySpace.SMEM),
                # x tile, pipelined over the batch grid
                pl.BlockSpec((tb, i_pad), lambda i: (i, 0)),
                # weights: same block every iteration -> VMEM-resident
                pl.BlockSpec((degree * i_pad, o_pad), lambda i: (0, 0)),
                # bias: resident
                pl.BlockSpec((1, o_pad), lambda i: (0, 0)),
            ],
            out_specs=pl.BlockSpec((tb, o_pad), lambda i: (i, 0)),
            scratch_shapes=[pltpu.VMEM((tb, degree * i_pad), jnp.bfloat16)],
        ),
        compiler_params=pltpu.CompilerParams(
            dimension_semantics=("parallel",),  # v7x: split batch tiles over 2 TCs
        ),
    )(coefs, x_p, w, bias)

    return out[:batch, :output_dim]


def _reference(x, coeffs, a, b, c, degree):
    """Pure-JAX reference mirroring the PyTorch forward."""
    a = a[0]; b = b[0]; c = c[0]
    xt = jnp.tanh(x.astype(jnp.float32))
    basis = [jnp.ones_like(xt)]
    if degree >= 1:
        basis.append((xt - a) / (b + c + 1.0))
    for n in range(2, degree + 1):
        An = (2 * n + b + c - 1) * (2 * n + b + c) / (2 * (n + b + c))
        Cn = -(n + b - 1) * (n + c - 1) / (2 * (n + b + c))
        basis.append(((xt - An) * basis[n - 1] - Cn * basis[n - 2]) / (n + b + c))
    bas = jnp.stack(basis, axis=-1)  # (B, I, D+1)
    return jnp.einsum("bid,iod->bo", bas, coeffs.astype(jnp.float32))


if __name__ == "__main__":
    # Small shapes consistent with the module's forward (x: (batch, input_dim))
    batch, input_dim, output_dim, degree = 8, 16, 32, 4

    key = jax.random.PRNGKey(0)
    k_x, k_w = jax.random.split(key)

    x = jax.random.normal(k_x, (batch, input_dim), dtype=jnp.float32)

    # Deterministic parameter init mirroring the PyTorch __init__:
    #   a, b, c = zeros(1);  coeffs ~ N(0, 1/(input_dim*(degree+1)))
    a = jnp.zeros((1,), jnp.float32)
    b = jnp.zeros((1,), jnp.float32)
    c = jnp.zeros((1,), jnp.float32)
    coeffs = jax.random.normal(
        k_w, (input_dim, output_dim, degree + 1), dtype=jnp.float32
    ) * (1.0 / (input_dim * (degree + 1)))

    y = bannai_ito_kan_layer(x, coeffs, a, b, c, degree=degree)
    y = jax.block_until_ready(y)

    y_ref = _reference(x, coeffs, a, b, c, degree)
    assert y.shape == (batch, output_dim)
    # bf16 MXU operands with f32 accumulation -> slightly looser tolerance.
    assert jnp.allclose(y, y_ref, atol=2e-2, rtol=2e-2), "mismatch vs reference"

    print("KERNEL_OK")
</pallas_src>

<mosaic_0001>
module attributes {stable_mosaic.version = 11 : i64} {
  func.func @_bannai_ito_kan_kernel(%arg0: i32, %arg1: memref<15xf32, #tpu.memory_space<smem>>, %arg2: memref<16x128xf32, #tpu.memory_space<vmem>>, %arg3: memref<512x128xbf16, #tpu.memory_space<vmem>>, %arg4: memref<1x128xf32, #tpu.memory_space<vmem>>, %arg5: memref<16x128xf32, #tpu.memory_space<vmem>>, %arg6: memref<16x512xbf16, #tpu.memory_space<vmem>>) attributes {dimension_semantics = [#tpu.dimension_semantics<parallel>], iteration_bounds = array<i64: 1>, scalar_prefetch = 0 : i64, scratch_operands = 1 : i64, tpu.core_type = #tpu.core_type<tc>, window_params = [{transform_indices = @transform_0, window_bounds = array<i64: 15>}, {transform_indices = @transform_1, window_bounds = array<i64: 16, 128>}, {pipeline_mode = #tpu.pipeline_mode<synchronous>, transform_indices = @transform_2, window_bounds = array<i64: 512, 128>}, {pipeline_mode = #tpu.pipeline_mode<synchronous>, transform_indices = @transform_3, window_bounds = array<i64: 1, 128>}, {transform_indices = @transform_4, window_bounds = array<i64: 16, 128>}]} {
    %c0 = arith.constant 0 : index
    %c0_0 = arith.constant 0 : index
    %0 = vector.load %arg2[%c0, %c0_0] : memref<16x128xf32, #tpu.memory_space<vmem>>, vector<16x128xf32>
    %1 = math.tanh %0 : vector<16x128xf32>
    %cst = arith.constant 1.000000e+00 : f32
    %2 = vector.broadcast %cst : f32 to vector<16x128xf32>
    %c1 = arith.constant 1 : index
    %3 = memref.load %arg1[%c1] : memref<15xf32, #tpu.memory_space<smem>>
    %c11 = arith.constant 11 : index
    %4 = memref.load %arg1[%c11] : memref<15xf32, #tpu.memory_space<smem>>
    %5 = vector.broadcast %3 : f32 to vector<16x128xf32>
    %6 = arith.subf %1, %5 : vector<16x128xf32>
    %7 = vector.broadcast %4 : f32 to vector<16x128xf32>
    %8 = arith.mulf %6, %7 : vector<16x128xf32>
    %9 = arith.truncf %8 : vector<16x128xf32> to vector<16x128xbf16>
    %c0_1 = arith.constant 0 : index
    %c0_2 = arith.constant 0 : index
    %10 = vector.load %arg6[%c0_1, %c0_2] : memref<16x512xbf16, #tpu.memory_space<vmem>>, vector<16x128xbf16>
    tpu.vector_store %arg6[%c0_1, %c0_2], %9 {strides = array<i32>} : memref<16x512xbf16, #tpu.memory_space<vmem>>, vector<16x128xbf16>,
    %c2 = arith.constant 2 : index
    %11 = memref.load %arg1[%c2] : memref<15xf32, #tpu.memory_space<smem>>
    %c7 = arith.constant 7 : index
    %12 = memref.load %arg1[%c7] : memref<15xf32, #tpu.memory_space<smem>>
    %c12 = arith.constant 12 : index
    %13 = memref.load %arg1[%c12] : memref<15xf32, #tpu.memory_space<smem>>
    %14 = vector.broadcast %11 : f32 to vector<16x128xf32>
    %15 = arith.subf %1, %14 : vector<16x128xf32>
    %16 = arith.mulf %15, %8 : vector<16x128xf32>
    %17 = vector.broadcast %12 : f32 to vector<16x128xf32>
    %18 = arith.mulf %17, %2 : vector<16x128xf32>
    %19 = arith.subf %16, %18 : vector<16x128xf32>
    %20 = vector.broadcast %13 : f32 to vector<16x128xf32>
    %21 = arith.mulf %19, %20 : vector<16x128xf32>
    %22 = arith.truncf %21 : vector<16x128xf32> to vector<16x128xbf16>
    %c0_3 = arith.constant 0 : index
    %c128 = arith.constant 128 : index
    %23 = vector.load %arg6[%c0_3, %c128] : memref<16x512xbf16, #tpu.memory_space<vmem>>, vector<16x128xbf16>
    tpu.vector_store %arg6[%c0_3, %c128], %22 {strides = array<i32>} : memref<16x512xbf16, #tpu.memory_space<vmem>>, vector<16x128xbf16>,
    %c3 = arith.constant 3 : index
    %24 = memref.load %arg1[%c3] : memref<15xf32, #tpu.memory_space<smem>>
    %c8 = arith.constant 8 : index
    %25 = memref.load %arg1[%c8] : memref<15xf32, #tpu.memory_space<smem>>
    %c13 = arith.constant 13 : index
    %26 = memref.load %arg1[%c13] : memref<15xf32, #tpu.memory_space<smem>>
    %27 = vector.broadcast %24 : f32 to vector<16x128xf32>
    %28 = arith.subf %1, %27 : vector<16x128xf32>
    %29 = arith.mulf %28, %21 : vector<16x128xf32>
    %30 = vector.broadcast %25 : f32 to vector<16x128xf32>
    %31 = arith.mulf %30, %8 : vector<16x128xf32>
    %32 = arith.subf %29, %31 : vector<16x128xf32>
    %33 = vector.broadcast %26 : f32 to vector<16x128xf32>
    %34 = arith.mulf %32, %33 : vector<16x128xf32>
    %35 = arith.truncf %34 : vector<16x128xf32> to vector<16x128xbf16>
    %c0_4 = arith.constant 0 : index
    %c256 = arith.constant 256 : index
    %36 = vector.load %arg6[%c0_4, %c256] : memref<16x512xbf16, #tpu.memory_space<vmem>>, vector<16x128xbf16>
    tpu.vector_store %arg6[%c0_4, %c256], %35 {strides = array<i32>} : memref<16x512xbf16, #tpu.memory_space<vmem>>, vector<16x128xbf16>,
    %c4 = arith.constant 4 : index
    %37 = memref.load %arg1[%c4] : memref<15xf32, #tpu.memory_space<smem>>
    %c9 = arith.constant 9 : index
    %38 = memref.load %arg1[%c9] : memref<15xf32, #tpu.memory_space<smem>>
    %c14 = arith.constant 14 : index
    %39 = memref.load %arg1[%c14] : memref<15xf32, #tpu.memory_space<smem>>
    %40 = vector.broadcast %37 : f32 to vector<16x128xf32>
    %41 = arith.subf %1, %40 : vector<16x128xf32>
    %42 = arith.mulf %41, %34 : vector<16x128xf32>
    %43 = vector.broadcast %38 : f32 to vector<16x128xf32>
    %44 = arith.mulf %43, %21 : vector<16x128xf32>
    %45 = arith.subf %42, %44 : vector<16x128xf32>
    %46 = vector.broadcast %39 : f32 to vector<16x128xf32>
    %47 = arith.mulf %45, %46 : vector<16x128xf32>
    %48 = arith.truncf %47 : vector<16x128xf32> to vector<16x128xbf16>
    %c0_5 = arith.constant 0 : index
    %c384 = arith.constant 384 : index
    %49 = vector.load %arg6[%c0_5, %c384] : memref<16x512xbf16, #tpu.memory_space<vmem>>, vector<16x128xbf16>
    tpu.vector_store %arg6[%c0_5, %c384], %48 {strides = array<i32>} : memref<16x512xbf16, #tpu.memory_space<vmem>>, vector<16x128xbf16>,
    %c0_6 = arith.constant 0 : index
    %c0_7 = arith.constant 0 : index
    %50 = vector.load %arg6[%c0_6, %c0_7] : memref<16x512xbf16, #tpu.memory_space<vmem>>, vector<16x512xbf16>
    %c0_8 = arith.constant 0 : index
    %c0_9 = arith.constant 0 : index
    %51 = vector.load %arg3[%c0_8, %c0_9] : memref<512x128xbf16, #tpu.memory_space<vmem>>, vector<512x128xbf16>
    %cst_10 = arith.constant dense<0.000000e+00> : vector<16x128xf32>
    %52 = tpu.matmul %50, %51, %cst_10 {dimension_numbers = #tpu.dot_dimension_numbers<[1], [0], [0], [1], [0, 0, 1, 1], [], []>} : vector<16x512xbf16>, vector<512x128xbf16>, vector<16x128xf32> -> vector<16x128xf32>
    %c0_11 = arith.constant 0 : index
    %c0_12 = arith.constant 0 : index
    %53 = vector.load %arg4[%c0_11, %c0_12] : memref<1x128xf32, #tpu.memory_space<vmem>>, vector<1x128xf32>
    %54 = vector.broadcast %53 : vector<1x128xf32> to vector<16x128xf32>
    %55 = arith.addf %52, %54 : vector<16x128xf32>
    %c0_13 = arith.constant 0 : index
    %c0_14 = arith.constant 0 : index
    %56 = vector.load %arg5[%c0_13, %c0_14] : memref<16x128xf32, #tpu.memory_space<vmem>>, vector<16x128xf32>
    tpu.vector_store %arg5[%c0_13, %c0_14], %55 {strides = array<i32>} : memref<16x128xf32, #tpu.memory_space<vmem>>, vector<16x128xf32>,
    return
  }
  func.func @transform_0(%arg0: i32) -> i32 {
    %c0_i32 = arith.constant 0 : i32
    %c0_i32_0 = arith.constant 0 : i32
    return %c0_i32 : i32
  }
  func.func @transform_1(%arg0: i32) -> (i32, i32) {
    %c0_i32 = arith.constant 0 : i32
    %c0_i32_0 = arith.constant 0 : i32
    return %arg0, %c0_i32 : i32, i32
  }
  func.func @transform_2(%arg0: i32) -> (i32, i32) {
    %c0_i32 = arith.constant 0 : i32
    %c0_i32_0 = arith.constant 0 : i32
    %c0_i32_1 = arith.constant 0 : i32
    return %c0_i32, %c0_i32_0 : i32, i32
  }
  func.func @transform_3(%arg0: i32) -> (i32, i32) {
    %c0_i32 = arith.constant 0 : i32
    %c0_i32_0 = arith.constant 0 : i32
    %c0_i32_1 = arith.constant 0 : i32
    return %c0_i32, %c0_i32_0 : i32, i32
  }
  func.func @transform_4(%arg0: i32) -> (i32, i32) {
    %c0_i32 = arith.constant 0 : i32
    %c0_i32_0 = arith.constant 0 : i32
    return %arg0, %c0_i32 : i32, i32
  }
}

</mosaic_0001>

<bundles_post_ra>
// kernel: tpu_custom_call.1
= control target key start
LH: loop header
LB: loop body
LE: loop exit
PB: predicated region body
PF: predicated region fallthrough
CT: control target
= control target key end

     0   :  { %9 = vsyncpa [#allocation6], 0  ;;  %s803_s0 = inlined_call_operand.hbm [shape: f32[15], index: 0, kind: input, shape index: {}]   ;;  %s804_s1 = inlined_call_operand.hbm [shape: f32[16,128], index: 1, kind: input, shape index: {}]   ;;  %s805_s2 = inlined_call_operand.hbm [shape: bf16[512,128], index: 2, kind: input, shape index: {}]   ;;  %s806_s3 = inlined_call_operand.vmem [shape: f32[1,128], index: 3, kind: input, shape index: {}]   ;;  %s807_s4 = inlined_call_operand.hbm [shape: f32[16,128], index: 4, kind: output, shape index: {}]  }
   0x1   :  { %10 = vsyncpa [#allocation4], 0 }
   0x2   :  { %11 = vsyncpa [#allocation9], 0 }
   0x3   :  { %12 = vsyncpa [#allocation5], 0  ;;  %s626_s17 = scalar_lea.hbm %s803_s0, 16 }
   0x4   :  { %p627_p0 = scmp.ne.s32.totalorder %s803_s0, %s626_s17  ;;  %p630_p1 = scmp.lt.u32.totalorder %s626_s17, %s803_s0 }
   0x6   :  { %p632_p2 = pnand %p630_p1, %p627_p0 }
   0x8   :  { %635 = shalt.err (!%p632_p2)
}
   0x9   :  { %s710_s22 = smov [#allocation3]   ;;  %s711_s25 = smov [#allocation7]  }
   0xa   :  { %20 = dma.hbm_to_smem %s803_s0, 16, %s710_s22, [#allocation6]  }
   0xb   :  { %s26_s26 = sshll.u32 %s711_s25, 4  ;;  %s636_s29 = scalar_lea.hbm %s804_s1, 256  ;;  %s27_s26 = int_to_ptr.vmem [resolvable:$true] %s26_s26 }
   0xc   :  { %p637_p3 = scmp.ne.s32.totalorder %s804_s1, %s636_s29  ;;  %p640_p4 = scmp.lt.u32.totalorder %s636_s29, %s804_s1 }
   0xe   :  { %p642_p5 = pnand %p640_p4, %p637_p3 }
  0x10   :  { %645 = shalt.err (!%p642_p5)
}
  0x11   :  { %s646_s8 = scalar_lea.vmem %s27_s26, 256  ;;  %p651_p7 = scmp.lt.s32.totalorder %s27_s26, %s27_s26 }
  0x12   :  { %p647_p6 = scmp.ne.s32.totalorder %s27_s26, %s646_s8  ;;  %p652_p8 = scmp.lt.s32.totalorder %s646_s8, %s646_s8 }
  0x14   :  { %p653_p9 = por %p652_p8, %p651_p7 }
  0x16   :  { %p654_p10 = pnand %p653_p9, %p647_p6 }
  0x18   :  { %657 = shalt.err (!%p654_p10)
}
  0x19   :  { %s712_s0 = smov 128   ;;  %s713_s9 = smov 8  }
  0x1a   :  { %32 = dma.hbm_to_vmem [thread:$0]  %s804_s1, 256, %s27_s26, [#allocation4], %s712_s0, %s712_s0, %s713_s9  }
  0x1b   :  { %s714_s12 = smov [#allocation8]   ;;  %s658_s16 = scalar_lea.hbm %s805_s2, 4096 }
  0x1c   :  { %s38_s13 = sshll.u32 %s714_s12, 4  ;;  %p659_p11 = scmp.ne.s32.totalorder %s805_s2, %s658_s16  ;;  %s39_s13 = int_to_ptr.vmem [resolvable:$true] %s38_s13 }
  0x1d   :  { %p662_p12 = scmp.lt.u32.totalorder %s658_s16, %s805_s2 }
  0x1f   :  { %p664_p13 = pnand %p662_p12, %p659_p11 }
  0x21   :  { %667 = shalt.err (!%p664_p13)
}
  0x22   :  { %s668_s21 = scalar_lea.vmem %s39_s13, 4096  ;;  %p673_p1 = scmp.lt.s32.totalorder %s39_s13, %s39_s13 }
  0x23   :  { %p669_p0 = scmp.ne.s32.totalorder %s39_s13, %s668_s21  ;;  %p674_p2 = scmp.lt.s32.totalorder %s668_s21, %s668_s21 }
  0x25   :  { %p675_p3 = por %p674_p2, %p673_p1 }
  0x27   :  { %p676_p4 = pnand %p675_p3, %p669_p0 }
  0x29   :  { %679 = shalt.err (!%p676_p4)
}
  0x2a   :  { %s715_s1 = smov 64   ;;  %s716_s22 = smov 4  }
  0x2b   :  { %44 = dma.hbm_to_vmem [thread:$0]  %s805_s2, 4096, %s39_s13, [#allocation9], %s715_s1, %s715_s1, %s716_s22  }
  0x2c   :  { %702 = dma.done.wait [#allocation6], 16  }
  0x2d   :  { %703 = vsyncadd [#allocation6], 4294967280 }
  0x2e   :  { %704 = dma.done.wait [#allocation4], 256  }
  0x2f   :  { %705 = vsyncadd [#allocation4], 4294967040 }
  0x30   :  { %706 = dma.done.wait [#allocation9], 4096  }
  0x31   :  { %707 = vsyncadd [#allocation9], 4294963200 }
  0x32   :  { %56 = sfence }
  0x33   :  { %v590_v0 = vld [vmem:[#allocation8 + $0x40] sm:$0xff]   ;;  %v594_v4 = vld [vmem:[#allocation8 + $0x48] sm:$0xff]   ;;  %v598_v8 = vld [vmem:[#allocation8 + $0x50] sm:$0xff]   ;;  %s494_s2 = sld [smem:[#allocation3 + $0x1]]  ;;  %s496_s25 = sld [smem:[#allocation3 + $0x2]] }
  0x34   :  { %v591_v1 = vld [vmem:[#allocation8] sm:$0xff]   ;;  %538 = vmatprep.subr.bf16.mxu0 %v590_v0  ;;  %v595_v5 = vld [vmem:[#allocation8 + $0x8] sm:$0xff]   ;;  %v599_v9 = vld [vmem:[#allocation8 + $0x10] sm:$0xff]   ;;  %s495_s26 = sld [smem:[#allocation3 + $0xb]]  ;;  %s497_s27 = sld [smem:[#allocation3 + $0x7]] }
  0x35   :  { %v592_v2 = vld [vmem:[#allocation8 + $0xc0] sm:$0xff]   ;;  %539 = vmatpush3.bf16.msra.mxu0 %v591_v1  ;;  %v596_v6 = vld [vmem:[#allocation8 + $0xc8] sm:$0xff]   ;;  %v600_v10 = vld [vmem:[#allocation8 + $0xd0] sm:$0xff]   ;;  %s499_s28 = sld [smem:[#allocation3 + $0x3]]  ;;  %s498_s29 = sld [smem:[#allocation3 + $0xc]] }
  0x36   :  { %v593_v3 = vld [vmem:[#allocation8 + $0x80] sm:$0xff]   ;;  %560 = vmatprep.subr.bf16.mxu1 %v592_v2  ;;  %540 = vmatprep.subr.bf16.mxu0 %v594_v4  ;;  %v597_v7 = vld [vmem:[#allocation8 + $0x88] sm:$0xff]   ;;  %v601_v11 = vld [vmem:[#allocation8 + $0x90] sm:$0xff]   ;;  %s500_s30 = sld [smem:[#allocation3 + $0x8]]  ;;  %s782_s5 = sld [smem:[#allocation3 + $0x4]] }
  0x37   :  { %561 = vmatpush3.bf16.msra.mxu1 %v593_v3  ;;  %v602_v12 = vld [vmem:[#allocation8 + $0x58] sm:$0xff]   ;;  %v606_v16 = vld [vmem:[#allocation8 + $0x60] sm:$0xff]   ;;  %v610_v20 = vld [vmem:[#allocation8 + $0x68] sm:$0xff]   ;;  %s501_s6 = sld [smem:[#allocation3 + $0xd]]  ;;  %s503_s7 = sld [smem:[#allocation3 + $0x9]] }
  0x38   :  { %562 = vmatprep.subr.bf16.mxu1 %v596_v6  ;;  %v603_v13 = vld [vmem:[#allocation8 + $0x18] sm:$0xff]   ;;  %v607_v17 = vld [vmem:[#allocation8 + $0x20] sm:$0xff]   ;;  %v611_v21 = vld [vmem:[#allocation8 + $0x28] sm:$0xff]   ;;  %s504_s8 = sld [smem:[#allocation3 + $0xe]]  ;;  %s717_s12 = smov [#allocation10]  }
  0x39   :  { %541 = vmatpush3.bf16.msra.mxu0 %v595_v5  ;;  %v604_v14 = vld [vmem:[#allocation8 + $0xd8] sm:$0xff]   ;;  %v608_v18 = vld [vmem:[#allocation8 + $0xe0] sm:$0xff]   ;;  %v612_v22 = vld [vmem:[#allocation8 + $0xe8] sm:$0xff]   ;;  %v64_v34 = vstv %s494_s2  ;;  %v75_v35 = vstv %s496_s25  ;;  %s480_s13 = sshll.u32 %s717_s12, 4  ;;  %s481_s13 = int_to_ptr.vmem [resolvable:$true] %s480_s13 }
  0x3a   :  { %542 = vmatprep.subr.bf16.mxu0 %v598_v8  ;;  %v605_v15 = vld [vmem:[#allocation8 + $0x98] sm:$0xff]   ;;  %v609_v19 = vld [vmem:[#allocation8 + $0xa0] sm:$0xff]   ;;  %v613_v23 = vld [vmem:[#allocation8 + $0xa8] sm:$0xff]   ;;  %v67_v37 = vstv %s495_s26  ;;  %v80_v45 = vstv %s497_s27  ;;  %s680_s14 = scalar_lea.vmem %s481_s13, 256  ;;  %p685_p6 = scmp.lt.s32.totalorder %s481_s13, %s481_s13 }
  0x3b   :  { %563 = vmatpush3.bf16.msra.mxu1 %v597_v7  ;;  %v614_v24 = vld [vmem:[#allocation8 + $0x70] sm:$0xff]   ;;  %v618_v28 = vld [vmem:[#allocation8 + $0x78] sm:$0xff]   ;;  %v91_v46 = vstv %s499_s28  ;;  %v83_v49 = vstv %s498_s29  ;;  %p681_p5 = scmp.ne.s32.totalorder %s481_s13, %s680_s14  ;;  %p686_p7 = scmp.lt.s32.totalorder %s680_s14, %s680_s14 }
  0x3c   :  { %564 = vmatprep.subr.bf16.mxu1 %v600_v10  ;;  %v615_v25 = vld [vmem:[#allocation8 + $0x30] sm:$0xff]   ;;  %v619_v29 = vld [vmem:[#allocation8 + $0x38] sm:$0xff]   ;;  %v96_v50 = vstv %s500_s30  ;;  %v109_v59 = vstv %s782_s5 }
  0x3d   :  { %543 = vmatpush3.bf16.msra.mxu0 %v599_v9  ;;  %v616_v26 = vld [vmem:[#allocation8 + $0xf0] sm:$0xff]   ;;  %v620_v30 = vld [vmem:[#allocation8 + $0xf8] sm:$0xff]   ;;  %v101_v0 = vstv %s501_s6  ;;  %v114_v1 = vstv %s503_s7  ;;  %p687_p8 = por %p686_p7, %p685_p6 }
  0x3e   :  { %544 = vmatprep.subr.bf16.mxu0 %v602_v12  ;;  %v617_v27 = vld [vmem:[#allocation8 + $0xb0] sm:$0xff]   ;;  %v59_v32 = vld [vmem:[#allocation7 + $0x8] sm:$0xff]  ;;  %v119_v12 = vstv %s504_s8 }
  0x3f   :  { %565 = vmatpush3.bf16.msra.mxu1 %v601_v11  ;;  %v58_v31 = vld [vmem:[#allocation7] sm:$0xff]  ;;  %v621_v33 = vld [vmem:[#allocation8 + $0xb8] sm:$0xff]   ;;  %p688_p9 = pnand %p687_p8, %p681_p5 }
  0x40   :  { %566 = vmatprep.subr.bf16.mxu1 %v604_v14  ;;  %622 = vtanh.f32 %v58_v31 }
  0x41   :  { %545 = vmatpush3.bf16.msra.mxu0 %v603_v13  ;;  %624 = vtanh.f32 %v59_v32 }
  0x42   :  { %546 = vmatprep.subr.bf16.mxu0 %v606_v16 }
  0x43   :  { %567 = vmatpush3.bf16.msra.mxu1 %v605_v15 }
  0x44   :  { %568 = vmatprep.subr.bf16.mxu1 %v608_v18 }
  0x45   :  { %547 = vmatpush3.bf16.msra.mxu0 %v607_v17 }
  0x46   :  { %548 = vmatprep.subr.bf16.mxu0 %v610_v20 }
  0x47   :  { %569 = vmatpush3.bf16.msra.mxu1 %v609_v19 }
  0x48   :  { %570 = vmatprep.subr.bf16.mxu1 %v612_v22 }
  0x49   :  { %549 = vmatpush3.bf16.msra.mxu0 %v611_v21 }
  0x4a   :  { %550 = vmatprep.subr.bf16.mxu0 %v614_v24  ;;  %v623_v36 = vpop.eup %622 }
  0x4b   :  { %571 = vmatpush3.bf16.msra.mxu1 %v613_v23  ;;  %v625_v38 = vpop.eup %624  ;;  %v65_v39 = vsub.f32 %v623_v36, %v64_v34  ;;  %v76_v40 = vsub.f32 %v623_v36, %v75_v35  ;;  %v92_v52 = vsub.f32 %v623_v36, %v91_v46  ;;  %v110_v3 = vsub.f32 %v623_v36, %v109_v59 }
  0x4c   :  { %572 = vmatprep.subr.bf16.mxu1 %v616_v26  ;;  %v66_v41 = vsub.f32 %v625_v38, %v64_v34  ;;  %v77_v42 = vsub.f32 %v625_v38, %v75_v35  ;;  %v93_v54 = vsub.f32 %v625_v38, %v91_v46  ;;  %v111_v5 = vsub.f32 %v625_v38, %v109_v59 }
  0x4d   :  { %551 = vmatpush3.bf16.msra.mxu0 %v615_v25  ;;  %v68_v43 = vmul.f32 %v67_v37, %v65_v39  ;;  %v505_v25 = vld [vmem:[%s806_s3] ss:$0 sm:$0xff] }
  0x4e   :  { %552 = vmatprep.subr.bf16.mxu0 %v618_v28  ;;  %v69_v44 = vmul.f32 %v67_v37, %v66_v41 }
  0x4f   :  { %573 = vmatpush3.bf16.msra.mxu1 %v617_v27  ;;  %v78_v47 = vmul.f32 %v76_v40, %v68_v43  ;;  %v97_v56 = vmul.f32 %v96_v50, %v68_v43 }
  0x50   :  { %574 = vmatprep.subr.bf16.mxu1 %v620_v30  ;;  %v79_v48 = vmul.f32 %v77_v42, %v69_v44  ;;  %v98_v58 = vmul.f32 %v96_v50, %v69_v44  ;;  %v70_v61 = vpack.c.bf16 %v69_v44, %v68_v43 }
  0x51   :  { %553 = vmatpush3.bf16.msra.mxu0 %v619_v29  ;;  %v81_v51 = vsub.f32 %v78_v47, %v80_v45 }
  0x52   :  { %v82_v53 = vsub.f32 %v79_v48, %v80_v45 }
  0x53   :  { %575 = vmatpush3.bf16.msra.mxu1 %v621_v33  ;;  %v84_v55 = vmul.f32 %v83_v49, %v81_v51 }
  0x54   :  { %v85_v57 = vmul.f32 %v83_v49, %v82_v53 }
  0x55   :  { %v94_v60 = vmul.f32 %v92_v52, %v84_v55  ;;  %v115_v7 = vmul.f32 %v114_v1, %v84_v55 }
  0x56   :  { %v86_v62 = vpack.c.bf16 %v85_v57, %v84_v55  ;;  %v95_v63 = vmul.f32 %v93_v54, %v85_v57  ;;  %v116_v9 = vmul.f32 %v114_v1, %v85_v57 }
  0x57   :  { %v99_v2 = vsub.f32 %v94_v60, %v97_v56 }
  0x58   :  { %423 = vmatprep.mubr.bf16.mxu0 %v86_v62  ;;  %v100_v4 = vsub.f32 %v95_v63, %v98_v58 }
  0x59   :  { %424 = vmatmul.mubr.bf16.vlgmr.msra.gmra.mrb[0].mxu0 %v70_v61  ;;  %v102_v6 = vmul.f32 %v101_v0, %v99_v2 }
  0x5a   :  { %v103_v8 = vmul.f32 %v101_v0, %v100_v4 }
  0x5b   :  { %v112_v10 = vmul.f32 %v110_v3, %v102_v6 }
  0x5c   :  { %v113_v11 = vmul.f32 %v111_v5, %v103_v8  ;;  %v104_v17 = vpack.c.bf16 %v103_v8, %v102_v6 }
  0x5d   :  { %v117_v13 = vsub.f32 %v112_v10, %v115_v7 }
  0x5e   :  { %v118_v14 = vsub.f32 %v113_v11, %v116_v9 }
  0x5f   :  { %v120_v15 = vmul.f32 %v119_v12, %v117_v13 }
  0x60   :  { %v121_v16 = vmul.f32 %v119_v12, %v118_v14 }
  0x62   :  { %v122_v18 = vpack.c.bf16 %v121_v16, %v120_v15 }
  0x64   :  { %464 = vmatprep.mubr.bf16.mxu1 %v122_v18 }
  0x65   :  { %465 = vmatmul.mubr.bf16.vlgmr.msra.gmra.mrb[0].mxu1 %v104_v17 }
 0x12c   :  { %v554_v19 = vpop.f32.mrb[0].mxu0 }
 0x12d   :  { %v555_v20 = vpop.f32.mrb[1].mxu0 }
 0x12e   :  { %v556_v21 = vadd.f32 %v555_v20, %v554_v19  ;;  %v557_v22 = vpop.f32.mrb[2].mxu0 }
 0x12f   :  { %v558_v23 = vpop.f32.mrb[3].mxu0 }
 0x130   :  { %v559_v24 = vadd.f32 %v558_v23, %v557_v22  ;;  %v426_v26 = vadd.f32 %v556_v21, %v505_v25 }
 0x132   :  { %v429_v29 = vadd.f32 %v559_v24, %v505_v25 }
 0x138   :  { %v576_v27 = vpop.f32.mrb[0].mxu1 }
 0x139   :  { %v577_v28 = vpop.f32.mrb[1].mxu1 }
 0x13a   :  { %v578_v30 = vadd.f32 %v577_v28, %v576_v27  ;;  %v579_v31 = vpop.f32.mrb[2].mxu1 }
 0x13b   :  { %v580_v32 = vpop.f32.mrb[3].mxu1 }
 0x13c   :  { %v581_v33 = vadd.f32 %v580_v32, %v579_v31  ;;  %v467_v34 = vadd.f32 %v578_v30, %v426_v26 }
 0x13e   :  { %v470_v35 = vadd.f32 %v581_v33, %v429_v29  ;;  %473 = vst [vmem:[#allocation10] sm:$0xff] %v467_v34 }
 0x140   :  { %474 = vst [vmem:[#allocation10 + $0x8] sm:$0xff] %v470_v35 }
 0x141   :  { %691 = shalt.err (!%p688_p9)
}
 0x142   :  { %s692_s16 = scalar_lea.hbm %s807_s4, 256 }
 0x143   :  { %p693_p10 = scmp.ne.s32.totalorder %s807_s4, %s692_s16  ;;  %p696_p11 = scmp.lt.u32.totalorder %s692_s16, %s807_s4 }
 0x145   :  { %p698_p12 = pnand %p696_p11, %p693_p10 }
 0x147   :  { %701 = shalt.err (!%p698_p12)
}
 0x148   :  { %486 = dma.vmem_to_hbm [thread:$0]  %s481_s13, 256, %s807_s4, [#allocation5], %s712_s0, %s712_s0, %s713_s9  }
 0x149   :  { %708 = dma.done.wait [#allocation5], 256  }
 0x14a   :  { %709 = vsyncadd [#allocation5], 4294967040 }
 0x14b   :  { %490 = vsyncpa [#allocation4], 1 }
 0x14c   :  { %491 = vsyncpa [#allocation9], 1 }
 0x14d   :  { %492 = vsyncpa [#allocation5], 1 }
 0x14e   :  { %493 = vsyncpa [#allocation6], 1 }

</bundles_post_ra>
